<compile_context>
chip_gen: v5e
topology: v5e:2x2
jax: 0.10.0
libtpu: 0.0.40
codegen_flags: <defaults>
</compile_context>

<pallas_src>
import jax
import jax.numpy as jnp
from jax.experimental import pallas as pl
from jax.experimental.pallas import tpu as pltpu


def _round_up(a, b):
    return (a + b - 1) // b * b


def rbf_kernel(x_ref, ct_ref, x2_ref, c2_ref, s_ref, o_ref, acc_ref):
    # x_ref:  (tb, tk)   ct_ref: (tk, to)   x2_ref: (tb, 1)
    # c2_ref: (1, to)    s_ref:  (1, to)    o_ref:  (tb, to)
    # acc_ref: VMEM (tb, to) f32 accumulator for x @ C^T over the F (k) axis.
    k = pl.program_id(2)

    @pl.when(k == 0)
    def _():
        acc_ref[...] = jnp.zeros_like(acc_ref)

    acc_ref[...] += jnp.dot(
        x_ref[...], ct_ref[...], preferred_element_type=jnp.float32
    )

    @pl.when(k == pl.num_programs(2) - 1)
    def _():
        x2 = x2_ref[...]                       # (tb, 1)
        c2 = c2_ref[...]                       # (1, to)
        s = s_ref[...]                         # (1, to)
        # ||x - c||^2 = ||x||^2 + ||c||^2 - 2 x.c ; clamp for f32 cancellation.
        d2 = jnp.maximum(x2 + c2 - 2.0 * acc_ref[...], 0.0)
        dist = jnp.sqrt(d2) * s                # sqrt/exp go to the EUP slot
        o_ref[...] = jnp.exp(-dist).astype(o_ref.dtype)


def rbf_forward(x, centres, sigmas, *, tb=256, to=256, tk=512):
    B, F = x.shape
    O, F2 = centres.shape
    assert F == F2

    compute_dtype = jnp.float32
    xf = x.astype(compute_dtype)
    cf = centres.astype(compute_dtype)
    sf = sigmas.astype(compute_dtype)

    # ---- tile-size derivation (clamped to padded problem sizes) -------------
    tb = max(8, min(tb, _round_up(B, 8)))          # f32 sublane multiple
    to = _round_up(min(to, _round_up(O, 128)), 128)  # lane-dense output tile
    O_pad = _round_up(O, to)

    if F <= tk:
        tk_eff = F
        F_pad = F
    else:
        tk_eff = _round_up(tk, 128)
        F_pad = _round_up(F, tk_eff)

    # Zero-pad F (no-op for norms / dot products) so K tiles are exact.
    if F_pad != F:
        xf = jnp.pad(xf, ((0, 0), (0, F_pad - F)))
        cf = jnp.pad(cf, ((0, 0), (0, F_pad - F)))

    # Pre-transposed centres (F_pad, O_pad); padded columns are zero.
    ct = jnp.zeros((F_pad, O_pad), compute_dtype).at[:, :O].set(cf.T)
    # Precomputed centre norms and sigmas as lane-major (1, O_pad) rows.
    c2 = jnp.zeros((1, O_pad), compute_dtype).at[:, :O].set(
        jnp.sum(cf * cf, axis=-1)[None, :])
    s2 = jnp.zeros((1, O_pad), compute_dtype).at[:, :O].set(sf[None, :])
    # Precomputed per-row ||x||^2, (B, 1).
    x2 = jnp.sum(xf * xf, axis=-1, keepdims=True)

    nb = pl.cdiv(B, tb)
    no = O_pad // to
    nk = F_pad // tk_eff

    out = pl.pallas_call(
        rbf_kernel,
        out_shape=jax.ShapeDtypeStruct((B, O_pad), x.dtype),
        grid_spec=pltpu.PrefetchScalarGridSpec(
            num_scalar_prefetch=0,
            grid=(nb, no, nk),
            in_specs=[
                pl.BlockSpec((tb, tk_eff), lambda b, o, k: (b, k)),  # x tile
                pl.BlockSpec((tk_eff, to), lambda b, o, k: (k, o)),  # C^T tile
                pl.BlockSpec((tb, 1), lambda b, o, k: (b, 0)),       # ||x||^2
                pl.BlockSpec((1, to), lambda b, o, k: (0, o)),       # ||c||^2
                pl.BlockSpec((1, to), lambda b, o, k: (0, o)),       # sigmas
            ],
            out_specs=pl.BlockSpec((tb, to), lambda b, o, k: (b, o)),
            scratch_shapes=[pltpu.VMEM((tb, to), jnp.float32)],
        ),
        compiler_params=pltpu.CompilerParams(
            dimension_semantics=("parallel", "parallel", "arbitrary")),
    )(xf, ct, x2, c2, s2)

    return out[:, :O]


def rbf_reference(x, centres, sigmas):
    diff = x[:, None, :].astype(jnp.float32) - centres[None, :, :].astype(jnp.float32)
    dist = jnp.sqrt(jnp.sum(diff * diff, axis=-1)) * sigmas[None, :].astype(jnp.float32)
    return jnp.exp(-dist).astype(x.dtype)


def _run_case(key, batch, in_features, out_features):
    kx, kc = jax.random.split(key)
    centres = jax.random.normal(kc, (out_features, in_features), dtype=jnp.float32)
    sigmas = jnp.ones((out_features,), dtype=jnp.float32)
    x = jax.random.normal(kx, (batch, in_features), dtype=jnp.float32)

    out = jax.block_until_ready(rbf_forward(x, centres, sigmas))
    ref = rbf_reference(x, centres, sigmas)

    assert out.shape == (batch, out_features)
    # Tolerances cover MXU rounding of the f32 matmul on all generations.
    assert jnp.allclose(out, ref, atol=1e-4, rtol=2e-2), (
        f"mismatch: max abs err = {jnp.max(jnp.abs(out - ref))}")
    return out


if __name__ == "__main__":
    key = jax.random.PRNGKey(0)
    k1, k2 = jax.random.split(key)

    # Small case matching the original module's scale (exercises O-padding).
    _run_case(k1, batch=8, in_features=32, out_features=16)
    # Slightly larger case that exercises F (K-axis) tiling + accumulation.
    _run_case(k2, batch=16, in_features=640, out_features=200)

    print("KERNEL_OK")
</pallas_src>

<mosaic_0001>
module attributes {stable_mosaic.version = 11 : i64} {
  func.func @rbf_kernel(%arg0: i32, %arg1: i32, %arg2: i32, %arg3: memref<8x32xf32, #tpu.memory_space<vmem>>, %arg4: memref<32x128xf32, #tpu.memory_space<vmem>>, %arg5: memref<8x1xf32, #tpu.memory_space<vmem>>, %arg6: memref<1x128xf32, #tpu.memory_space<vmem>>, %arg7: memref<1x128xf32, #tpu.memory_space<vmem>>, %arg8: memref<8x128xf32, #tpu.memory_space<vmem>>, %arg9: memref<8x128xf32, #tpu.memory_space<vmem>>) attributes {dimension_semantics = [#tpu.dimension_semantics<parallel>, #tpu.dimension_semantics<parallel>, #tpu.dimension_semantics<arbitrary>], iteration_bounds = array<i64: 1, 1, 1>, scalar_prefetch = 0 : i64, scratch_operands = 1 : i64, tpu.core_type = #tpu.core_type<tc>, window_params = [{transform_indices = @transform_0, window_bounds = array<i64: 8, 32>}, {transform_indices = @transform_1, window_bounds = array<i64: 32, 128>}, {transform_indices = @transform_2, window_bounds = array<i64: 8, 1>}, {transform_indices = @transform_3, window_bounds = array<i64: 1, 128>}, {transform_indices = @transform_4, window_bounds = array<i64: 1, 128>}, {transform_indices = @transform_5, window_bounds = array<i64: 8, 128>}]} {
    %c0_i32 = arith.constant 0 : i32
    %0 = arith.cmpi eq, %arg2, %c0_i32 : i32
    %1 = arith.extui %0 : i1 to i32
    %c0_i32_0 = arith.constant 0 : i32
    %2 = arith.cmpi ne, %1, %c0_i32_0 : i32
    scf.if %2 {
      %cst_10 = arith.constant 0.000000e+00 : f32
      %12 = vector.broadcast %cst_10 : f32 to vector<8x128xf32>
      %c0_11 = arith.constant 0 : index
      %c0_12 = arith.constant 0 : index
      %13 = vector.load %arg9[%c0_11, %c0_12] : memref<8x128xf32, #tpu.memory_space<vmem>>, vector<8x128xf32>
      tpu.vector_store %arg9[%c0_11, %c0_12], %12 {strides = array<i32>} : memref<8x128xf32, #tpu.memory_space<vmem>>, vector<8x128xf32>,
    } else {
    }
    %c0 = arith.constant 0 : index
    %c0_1 = arith.constant 0 : index
    %3 = vector.load %arg9[%c0, %c0_1] : memref<8x128xf32, #tpu.memory_space<vmem>>, vector<8x128xf32>
    %c0_2 = arith.constant 0 : index
    %c0_3 = arith.constant 0 : index
    %4 = vector.load %arg3[%c0_2, %c0_3] : memref<8x32xf32, #tpu.memory_space<vmem>>, vector<8x32xf32>
    %c0_4 = arith.constant 0 : index
    %c0_5 = arith.constant 0 : index
    %5 = vector.load %arg4[%c0_4, %c0_5] : memref<32x128xf32, #tpu.memory_space<vmem>>, vector<32x128xf32>
    %cst = arith.constant dense<0.000000e+00> : vector<8x128xf32>
    %6 = tpu.matmul %4, %5, %cst {dimension_numbers = #tpu.dot_dimension_numbers<[1], [0], [0], [1], [0, 0, 1, 1], [], []>} : vector<8x32xf32>, vector<32x128xf32>, vector<8x128xf32> -> vector<8x128xf32>
    %7 = arith.addf %3, %6 : vector<8x128xf32>
    %c0_6 = arith.constant 0 : index
    %c0_7 = arith.constant 0 : index
    %8 = vector.load %arg9[%c0_6, %c0_7] : memref<8x128xf32, #tpu.memory_space<vmem>>, vector<8x128xf32>
    tpu.vector_store %arg9[%c0_6, %c0_7], %7 {strides = array<i32>} : memref<8x128xf32, #tpu.memory_space<vmem>>, vector<8x128xf32>,
    %c0_i32_8 = arith.constant 0 : i32
    %9 = arith.cmpi eq, %arg2, %c0_i32_8 : i32
    %10 = arith.extui %9 : i1 to i32
    %c0_i32_9 = arith.constant 0 : i32
    %11 = arith.cmpi ne, %10, %c0_i32_9 : i32
    scf.if %11 {
      %c0_10 = arith.constant 0 : index
      %c0_11 = arith.constant 0 : index
      %12 = vector.load %arg5[%c0_10, %c0_11] : memref<8x1xf32, #tpu.memory_space<vmem>>, vector<8x1xf32>
      %c0_12 = arith.constant 0 : index
      %c0_13 = arith.constant 0 : index
      %13 = vector.load %arg6[%c0_12, %c0_13] : memref<1x128xf32, #tpu.memory_space<vmem>>, vector<1x128xf32>
      %c0_14 = arith.constant 0 : index
      %c0_15 = arith.constant 0 : index
      %14 = vector.load %arg7[%c0_14, %c0_15] : memref<1x128xf32, #tpu.memory_space<vmem>>, vector<1x128xf32>
      %15 = vector.broadcast %12 : vector<8x1xf32> to vector<8x128xf32>
      %16 = vector.broadcast %13 : vector<1x128xf32> to vector<8x128xf32>
      %17 = arith.addf %15, %16 : vector<8x128xf32>
      %c0_16 = arith.constant 0 : index
      %c0_17 = arith.constant 0 : index
      %18 = vector.load %arg9[%c0_16, %c0_17] : memref<8x128xf32, #tpu.memory_space<vmem>>, vector<8x128xf32>
      %cst_18 = arith.constant 2.000000e+00 : f32
      %19 = vector.broadcast %cst_18 : f32 to vector<8x128xf32>
      %20 = arith.mulf %19, %18 : vector<8x128xf32>
      %21 = arith.subf %17, %20 : vector<8x128xf32>
      %cst_19 = arith.constant 0.000000e+00 : f32
      %22 = vector.broadcast %cst_19 : f32 to vector<8x128xf32>
      %23 = arith.maximumf %21, %22 : vector<8x128xf32>
      %24 = math.sqrt %23 : vector<8x128xf32>
      %25 = vector.broadcast %14 : vector<1x128xf32> to vector<8x128xf32>
      %26 = arith.mulf %24, %25 : vector<8x128xf32>
      %cst_20 = arith.constant 0.000000e+00 : f32
      %27 = vector.broadcast %cst_20 : f32 to vector<8x128xf32>
      %28 = arith.subf %27, %26 : vector<8x128xf32>
      %29 = math.exp %28 : vector<8x128xf32>
      %c0_21 = arith.constant 0 : index
      %c0_22 = arith.constant 0 : index
      %30 = vector.load %arg8[%c0_21, %c0_22] : memref<8x128xf32, #tpu.memory_space<vmem>>, vector<8x128xf32>
      tpu.vector_store %arg8[%c0_21, %c0_22], %29 {strides = array<i32>} : memref<8x128xf32, #tpu.memory_space<vmem>>, vector<8x128xf32>,
    } else {
    }
    return
  }
  func.func @transform_0(%arg0: i32, %arg1: i32, %arg2: i32) -> (i32, i32) {
    %c0_i32 = arith.constant 0 : i32
    return %arg0, %arg2 : i32, i32
  }
  func.func @transform_1(%arg0: i32, %arg1: i32, %arg2: i32) -> (i32, i32) {
    %c0_i32 = arith.constant 0 : i32
    return %arg2, %arg1 : i32, i32
  }
  func.func @transform_2(%arg0: i32, %arg1: i32, %arg2: i32) -> (i32, i32) {
    %c0_i32 = arith.constant 0 : i32
    %c0_i32_0 = arith.constant 0 : i32
    return %arg0, %c0_i32 : i32, i32
  }
  func.func @transform_3(%arg0: i32, %arg1: i32, %arg2: i32) -> (i32, i32) {
    %c0_i32 = arith.constant 0 : i32
    %c0_i32_0 = arith.constant 0 : i32
    return %c0_i32, %arg1 : i32, i32
  }
  func.func @transform_4(%arg0: i32, %arg1: i32, %arg2: i32) -> (i32, i32) {
    %c0_i32 = arith.constant 0 : i32
    %c0_i32_0 = arith.constant 0 : i32
    return %c0_i32, %arg1 : i32, i32
  }
  func.func @transform_5(%arg0: i32, %arg1: i32, %arg2: i32) -> (i32, i32) {
    %c0_i32 = arith.constant 0 : i32
    return %arg0, %arg1 : i32, i32
  }
}

</mosaic_0001>

<bundles_post_ra>
// kernel: tpu_custom_call.1
= control target key start
LH: loop header
LB: loop body
LE: loop exit
PB: predicated region body
PF: predicated region fallthrough
CT: control target
= control target key end

     0   :  { %10 = vsyncpa [#allocation4], 0  ;;  %s248_s0 = inlined_call_operand.vmem [shape: f32[8,32], index: 0, kind: input, shape index: {}]   ;;  %s249_s1 = inlined_call_operand.hbm [shape: f32[32,128], index: 1, kind: input, shape index: {}]   ;;  %s250_s2 = inlined_call_operand.vmem [shape: f32[8,1], index: 2, kind: input, shape index: {}]   ;;  %s251_s3 = inlined_call_operand.vmem [shape: f32[1,128], index: 3, kind: input, shape index: {}]   ;;  %s252_s4 = inlined_call_operand.vmem [shape: f32[1,128], index: 4, kind: input, shape index: {}]   ;;  %s253_s5 = inlined_call_operand.hbm [shape: f32[8,128], index: 5, kind: output, shape index: {}]  }
   0x1   :  { %11 = vsyncpa [#allocation5], 0  ;;  %s18_s20 = sshll.u32 %s249_s1, 4  ;;  %s195_s21 = smov [#allocation3]   ;;  %s19_s20 = int_to_ptr.hbm [resolvable:$true] %s18_s20 }
   0x2   :  { %s20_s22 = sshll.u32 %s195_s21, 4  ;;  %s196_s23 = smov 128   ;;  %s21_s22 = int_to_ptr.vmem [resolvable:$true] %s20_s22 }
   0x3   :  { %s197_s24 = smov 8  }
   0x4   :  { %26 = dma.hbm_to_vmem [thread:$0]  %s19_s20, 512, %s21_s22, [#allocation4], %s196_s23, %s196_s23, %s197_s24  }
   0x5   :  { %191 = dma.done.wait [#allocation4], 512  }
   0x6   :  { %192 = vsyncadd [#allocation4], 4294966784  ;;  %v198_v0 = vmov 0   ;;  %v47_v1 = vld [vmem:[#allocation3 + $0x18] sm:$0xff]  ;;  %v46_v2 = vld [vmem:[#allocation3 + $0x10] sm:$0xff]  ;;  %vm48_vm0 = vcmask 261120  }
   0x7   :  { %136 = vset.pattern.permute.xlu0 %v198_v0  ;;  %64 = vmatpush.msra.mxu0 %v47_v1  ;;  %v77_v3 = vld [vmem:[%s250_s2] sm:$0xff]  ;;  %v45_v4 = vld [vmem:[#allocation3 + $0x8] sm:$0xff]  ;;  %s120_s8 = sshll.u32 %s253_s5, 4  ;;  %s121_s8 = int_to_ptr.hbm [resolvable:$true] %s120_s8 }
   0x8   :  { %82 = vperm.xlu0 %136, %v77_v3   ;;  %v44_v5 = vld [vmem:[#allocation3] sm:$0xff] }
   0x9   :  { %65 = vmatpush.msra.mxu0 %v46_v2  ;;  %v43_v6 = vld [vmem:[%s248_s0] sm:$0xff] }
   0xa   :  { %v137_v7 = vld [vmem:[%s251_s3] ss:$0 sm:$0xff]  ;;  %s199_s3 = smov [#allocation6]  }
   0xb   :  { %66 = vmatpush.msra.mxu0 %v45_v4  ;;  %v138_v21 = vld [vmem:[%s252_s4] ss:$0 sm:$0xff]  ;;  %s118_s30 = sshll.u32 %s199_s3, 4  ;;  %s119_s30 = int_to_ptr.vmem [resolvable:$true] %s118_s30 }
   0xd   :  { %67 = vmatpush.msra.mxu0 %v44_v5 }
   0xe   :  { %130 = vmatmul.msk.f32.vlgmr.msra.gmra.mxu0 %vm48_vm0, %v43_v6 }
  0x7a   :  { %v83_v8 = vpop.permute.xlu0 %82 }
  0x7b   :  { %v88_v9 = vadd.f32 %v137_v7, %v83_v8 }
  0x8b   :  { %v69_v10 = vpop.f32.mrf.mxu0 }
  0x8c   :  { %v90_v11 = vmul.f32 2.0, %v69_v10 }
  0x8e   :  { %v91_v12 = vsub.f32 %v88_v9, %v90_v11 }
  0x90   :  { %v92_v13 = vmax.f32 %v91_v12, 0.0 }
  0x92   :  { %139 = vrsqrt.f32 %v92_v13  ;;  %vm100_vm1 = vcmp.eq.f32.partialorder %v92_v13, inf  ;;  %v103_v22 = vand.u32 2147483648, %v92_v13  ;;  %vm102_vm2 = vcmp.eq.f32.partialorder %v92_v13, 0.0 }
  0x98   :  { %v140_v14 = vpop.eup %139 }
  0x99   :  { %v94_v15 = vmul.f32 %v140_v14, %v92_v13 }
  0x9b   :  { %v95_v16 = vmul.f32 %v140_v14, %v94_v15 }
  0x9d   :  { %v96_v17 = vmul.f32 0.5, %v95_v16 }
  0x9f   :  { %v97_v18 = vsub.f32 1.5, %v96_v17 }
  0xa1   :  { %v98_v19 = vmul.f32 %v140_v14, %v97_v18 }
  0xa3   :  { %v99_v20 = vmul.f32 %v98_v19, %v92_v13 }
  0xa5   :  { %v101_v23 = vsel %vm100_vm1, %v92_v13, %v99_v20 }
  0xa6   :  { %v104_v24 = vsel %vm102_vm2, %v103_v22, %v101_v23 }
  0xa7   :  { %v108_v25 = vmul.f32 %v138_v21, %v104_v24 }
  0xa9   :  { %v109_v26 = vsub.f32 0.0, %v108_v25 }
  0xab   :  { %v110_v27 = vmul.f32 1.442695, %v109_v26 }
  0xad   :  { %141 = vpow2.f32 %v110_v27 }
  0xb3   :  { %v142_v28 = vpop.eup %141 }
  0xb4   :  { %112 = vst [vmem:[#allocation6] sm:$0xff] %v142_v28 }
  0xb5   :  { %123 = dma.vmem_to_hbm [thread:$0]  %s119_s30, 128, %s121_s8, [#allocation5]  }
  0xb6   :  { %193 = dma.done.wait [#allocation5], 128  }
  0xb7   :  { %194 = vsyncadd [#allocation5], 4294967168 }
  0xb8   :  { %128 = vsyncpa [#allocation4], 1 }
  0xb9   :  { %129 = vsyncpa [#allocation5], 1 }

</bundles_post_ra>
